<compile_context>
chip_gen: v7x
topology: tpu7x:2x2x1
jax: 0.10.0
libtpu: 0.0.40
codegen_flags: <defaults>
</compile_context>

<pallas_src>
import jax
import jax.numpy as jnp
from jax.experimental import pallas as pl
from jax.experimental.pallas import tpu as pltpu


def _ranker_kernel(q_ref, d_ref, o_ref):
    # q_ref: (D, 1)  query column, resident across every grid step (RHS: K x 1)
    # d_ref: (TM, D) streamed document tile                          (LHS: M x K)
    # o_ref: (TM, 1) per-document scores
    # Natural MXU layout for both operands -> no hidden transpose of the tile.
    o_ref[...] = jnp.dot(
        d_ref[...], q_ref[...], preferred_element_type=jnp.float32
    )


def _round_up(x: int, m: int) -> int:
    return ((x + m - 1) // m) * m


def _choose_tile(n: int, tm: int) -> int:
    """Pick the document tile size (rows per grid step)."""
    # BlockSpec (8,128) divisibility: round caller tm down to a multiple of 128.
    tm = max(128, (int(tm) // 128) * 128)
    # Keep >= ~8 grid steps when N is large enough: feeds both v7x TensorCores
    # and amortizes the pipeline prologue/epilogue. No-op for small N or on
    # single-TC parts (v5e/v6e) where the grid is just a sequential loop.
    target = ((n // 8) // 128) * 128
    if target >= 128:
        tm = min(tm, target)
    # Tiny inputs: one full-extent block (always legal regardless of N % 8).
    if n <= tm:
        tm = n
    return tm


def ranker(query: jax.Array, documents: jax.Array, *, tm: int = 4096) -> jax.Array:
    """Pallas equivalent of Ranker.forward(query, documents).

    query:     (1, D) float32
    documents: (N, D) float32 (N need NOT divide tm)
    returns:   (N,)  float32  == sum(query * documents, axis=1)
    """
    n, d = documents.shape
    assert query.shape == (1, d)

    tm = _choose_tile(n, tm)
    grid = (pl.cdiv(n, tm),)

    # (D, 1) query column: the MXU's natural (K, N) RHS layout.
    q_col = query.reshape(d, 1)

    # VMEM budget: double-buffered, lane-padded footprint of every operand,
    # plus headroom.  At the default tm=4096, D=768 this is ~33 MiB — fine on
    # every generation (v7x has 64 MiB physical per TC); cap well below that.
    lane = 128
    docs_bytes = 2 * tm * _round_up(d, lane) * 4
    out_bytes = 2 * tm * lane * 4                    # (tm, 1) pads lanes to 128
    q_bytes = 2 * _round_up(d, 8) * lane * 4
    vmem_bytes = min(docs_bytes + out_bytes + q_bytes + (4 << 20), 56 << 20)

    out = pl.pallas_call(
        _ranker_kernel,
        out_shape=jax.ShapeDtypeStruct((n, 1), jnp.float32),
        grid_spec=pltpu.PrefetchScalarGridSpec(
            num_scalar_prefetch=0,
            grid=grid,
            in_specs=[
                pl.BlockSpec((d, 1), lambda i: (0, 0)),    # query column, resident
                pl.BlockSpec((tm, d), lambda i: (i, 0)),   # streamed document tile
            ],
            out_specs=pl.BlockSpec((tm, 1), lambda i: (i, 0)),
        ),
        compiler_params=pltpu.CompilerParams(
            dimension_semantics=("parallel",),
            vmem_limit_bytes=vmem_bytes,
        ),
        cost_estimate=pl.CostEstimate(
            flops=2 * n * d,
            transcendentals=0,
            bytes_accessed=4 * (n * d + d + n),
        ),
    )(q_col, documents)
    return out[:, 0]


if __name__ == "__main__":
    key = jax.random.PRNGKey(0)
    kq, kd, kd2, kd3 = jax.random.split(key, 4)

    D = 768  # embedding dim from the module (torch.ones(1, 768))
    query = jax.random.normal(kq, (1, D), dtype=jnp.float32)

    # Small case: tile clamps to the full document count (single block).
    N = 16
    documents = jax.random.normal(kd, (N, D), dtype=jnp.float32)
    scores = jax.block_until_ready(ranker(query, documents))
    ref = jnp.sum(query * documents, axis=1)
    assert scores.shape == (N,)
    assert jnp.allclose(scores, ref, rtol=1e-5, atol=1e-5)

    # Non-divisible case: exercises pl.cdiv grid + masked tail writeback.
    N2, TM2 = 300, 128
    documents2 = jax.random.normal(kd2, (N2, D), dtype=jnp.float32)
    scores2 = jax.block_until_ready(ranker(query, documents2, tm=TM2))
    ref2 = jnp.sum(query * documents2, axis=1)
    assert scores2.shape == (N2,)
    assert jnp.allclose(scores2, ref2, rtol=1e-5, atol=1e-5)

    # Default-tm path with a multi-step grid (tile-selection heuristic).
    N3 = 1024
    documents3 = jax.random.normal(kd3, (N3, D), dtype=jnp.float32)
    scores3 = jax.block_until_ready(ranker(query, documents3))
    ref3 = jnp.sum(query * documents3, axis=1)
    assert scores3.shape == (N3,)
    assert jnp.allclose(scores3, ref3, rtol=1e-5, atol=1e-5)

    print("KERNEL_OK")
</pallas_src>

<mosaic_0001>
module attributes {stable_mosaic.version = 11 : i64} {
  func.func @_ranker_kernel(%arg0: i32, %arg1: memref<768x1xf32, #tpu.memory_space<vmem>>, %arg2: memref<16x768xf32, #tpu.memory_space<vmem>>, %arg3: memref<16x1xf32, #tpu.memory_space<vmem>>) attributes {dimension_semantics = [#tpu.dimension_semantics<parallel>], iteration_bounds = array<i64: 1>, scalar_prefetch = 0 : i64, scratch_operands = 0 : i64, tpu.core_type = #tpu.core_type<tc>, window_params = [{pipeline_mode = #tpu.pipeline_mode<synchronous>, transform_indices = @transform_0, window_bounds = array<i64: 768, 1>}, {transform_indices = @transform_1, window_bounds = array<i64: 16, 768>}, {transform_indices = @transform_2, window_bounds = array<i64: 16, 1>}]} {
    %c0 = arith.constant 0 : index
    %c0_0 = arith.constant 0 : index
    %0 = vector.load %arg2[%c0, %c0_0] : memref<16x768xf32, #tpu.memory_space<vmem>>, vector<16x768xf32>
    %c0_1 = arith.constant 0 : index
    %c0_2 = arith.constant 0 : index
    %1 = vector.load %arg1[%c0_1, %c0_2] : memref<768x1xf32, #tpu.memory_space<vmem>>, vector<768x1xf32>
    %cst = arith.constant dense<0.000000e+00> : vector<16x1xf32>
    %2 = tpu.matmul %0, %1, %cst {dimension_numbers = #tpu.dot_dimension_numbers<[1], [0], [0], [1], [0, 0, 1, 1], [], []>} : vector<16x768xf32>, vector<768x1xf32>, vector<16x1xf32> -> vector<16x1xf32>
    %c0_3 = arith.constant 0 : index
    %c0_4 = arith.constant 0 : index
    %3 = vector.load %arg3[%c0_3, %c0_4] : memref<16x1xf32, #tpu.memory_space<vmem>>, vector<16x1xf32>
    tpu.vector_store %arg3[%c0_3, %c0_4], %2 {strides = array<i32>} : memref<16x1xf32, #tpu.memory_space<vmem>>, vector<16x1xf32>,
    return
  }
  func.func @transform_0(%arg0: i32) -> (i32, i32) {
    %c0_i32 = arith.constant 0 : i32
    %c0_i32_0 = arith.constant 0 : i32
    %c0_i32_1 = arith.constant 0 : i32
    return %c0_i32, %c0_i32_0 : i32, i32
  }
  func.func @transform_1(%arg0: i32) -> (i32, i32) {
    %c0_i32 = arith.constant 0 : i32
    %c0_i32_0 = arith.constant 0 : i32
    return %arg0, %c0_i32 : i32, i32
  }
  func.func @transform_2(%arg0: i32) -> (i32, i32) {
    %c0_i32 = arith.constant 0 : i32
    %c0_i32_0 = arith.constant 0 : i32
    return %arg0, %c0_i32 : i32, i32
  }
}

</mosaic_0001>

<bundles_post_ra>
// kernel: tpu_custom_call.1
= control target key start
LH: loop header
LB: loop body
LE: loop exit
PB: predicated region body
PF: predicated region fallthrough
CT: control target
= control target key end

     0   :  { %vm344_vm0 = vcmask 7168   ;;  %s922_s0 = inlined_call_operand.vmem [shape: f32[768,1], index: 0, kind: input, shape index: {}]   ;;  %s923_s1 = inlined_call_operand.vmem [shape: f32[16,768], index: 1, kind: input, shape index: {}]   ;;  %s924_s2 = inlined_call_operand.vmem [shape: f32[16,1], index: 2, kind: output, shape index: {}]  }
   0x1   :  { %v39_v0 = vld [vmem:[%s922_s0 + $0x80] sm:$0xff]  ;;  %v40_v1 = vld [vmem:[%s922_s0 + $0x88] sm:$0xff]  ;;  %v41_v11 = vld [vmem:[%s922_s0 + $0x90] sm:$0xff] }
   0x2   :  { %v71_v2 = vld [vmem:[%s922_s0 + $0x180] sm:$0xff]  ;;  %v465_v3 = vpack.c.bf16 %v40_v1, %v39_v0  ;;  %v72_v4 = vld [vmem:[%s922_s0 + $0x188] sm:$0xff]  ;;  %v42_v13 = vld [vmem:[%s922_s0 + $0x98] sm:$0xff] }
   0x3   :  { %v23_v5 = vld [vmem:[%s922_s0] sm:$0xff]  ;;  %v24_v6 = vld [vmem:[%s922_s0 + $0x8] sm:$0xff]  ;;  %v497_v7 = vpack.c.bf16 %v72_v4, %v71_v2  ;;  %v73_v14 = vld [vmem:[%s922_s0 + $0x190] sm:$0xff]  ;;  %v469_v16 = vpack.c.bf16 %v42_v13, %v41_v11 }
   0x4   :  { %v467_v8 = vpack.c.bf16 %v24_v6, %v23_v5  ;;  %v55_v9 = vld [vmem:[%s922_s0 + $0x100] sm:$0xff]  ;;  %v56_v10 = vld [vmem:[%s922_s0 + $0x108] sm:$0xff]  ;;  %466 = vmatprep.subr.bf16.mxu0 %v465_v3  ;;  %v74_v15 = vld [vmem:[%s922_s0 + $0x198] sm:$0xff] }
   0x5   :  { %v499_v12 = vpack.c.bf16 %v56_v10, %v55_v9  ;;  %498 = vmatprep.subr.bf16.mxu1 %v497_v7  ;;  %v501_v17 = vpack.c.bf16 %v74_v15, %v73_v14  ;;  %v25_v18 = vld [vmem:[%s922_s0 + $0x10] sm:$0xff]  ;;  %v26_v19 = vld [vmem:[%s922_s0 + $0x18] sm:$0xff]  ;;  %v43_v23 = vld [vmem:[%s922_s0 + $0xa0] sm:$0xff] }
   0x6   :  { %468 = vmatpush3.bf16.msra.mxu0 %v467_v8  ;;  %v57_v20 = vld [vmem:[%s922_s0 + $0x110] sm:$0xff]  ;;  %v471_v21 = vpack.c.bf16 %v26_v19, %v25_v18  ;;  %v58_v22 = vld [vmem:[%s922_s0 + $0x118] sm:$0xff]  ;;  %v44_v24 = vld [vmem:[%s922_s0 + $0xa8] sm:$0xff] }
   0x7   :  { %500 = vmatpush3.bf16.msra.mxu1 %v499_v12  ;;  %470 = vmatprep.subr.bf16.mxu0 %v469_v16  ;;  %v503_v25 = vpack.c.bf16 %v58_v22, %v57_v20  ;;  %v473_v26 = vpack.c.bf16 %v44_v24, %v43_v23  ;;  %v75_v27 = vld [vmem:[%s922_s0 + $0x1a0] sm:$0xff]  ;;  %v76_v28 = vld [vmem:[%s922_s0 + $0x1a8] sm:$0xff]  ;;  %v45_v35 = vld [vmem:[%s922_s0 + $0xb0] sm:$0xff] }
   0x8   :  { %502 = vmatprep.subr.bf16.mxu1 %v501_v17  ;;  %v27_v29 = vld [vmem:[%s922_s0 + $0x20] sm:$0xff]  ;;  %v505_v30 = vpack.c.bf16 %v76_v28, %v75_v27  ;;  %v28_v31 = vld [vmem:[%s922_s0 + $0x28] sm:$0xff]  ;;  %v46_v36 = vld [vmem:[%s922_s0 + $0xb8] sm:$0xff] }
   0x9   :  { %v59_v32 = vld [vmem:[%s922_s0 + $0x120] sm:$0xff]  ;;  %v60_v33 = vld [vmem:[%s922_s0 + $0x128] sm:$0xff]  ;;  %v475_v34 = vpack.c.bf16 %v28_v31, %v27_v29  ;;  %v77_v37 = vld [vmem:[%s922_s0 + $0x1b0] sm:$0xff]  ;;  %v477_v39 = vpack.c.bf16 %v46_v36, %v45_v35 }
   0xa   :  { %472 = vmatpush3.bf16.msra.mxu0 %v471_v21  ;;  %v507_v38 = vpack.c.bf16 %v60_v33, %v59_v32  ;;  %v78_v40 = vld [vmem:[%s922_s0 + $0x1b8] sm:$0xff]  ;;  %v29_v41 = vld [vmem:[%s922_s0 + $0x30] sm:$0xff]  ;;  %v47_v46 = vld [vmem:[%s922_s0 + $0xc0] sm:$0xff] }
   0xb   :  { %504 = vmatpush3.bf16.msra.mxu1 %v503_v25  ;;  %474 = vmatprep.subr.bf16.mxu0 %v473_v26  ;;  %v30_v42 = vld [vmem:[%s922_s0 + $0x38] sm:$0xff]  ;;  %v509_v43 = vpack.c.bf16 %v78_v40, %v77_v37  ;;  %v61_v44 = vld [vmem:[%s922_s0 + $0x130] sm:$0xff]  ;;  %v48_v47 = vld [vmem:[%s922_s0 + $0xc8] sm:$0xff] }
   0xc   :  { %506 = vmatprep.subr.bf16.mxu1 %v505_v30  ;;  %v62_v45 = vld [vmem:[%s922_s0 + $0x138] sm:$0xff]  ;;  %v79_v48 = vld [vmem:[%s922_s0 + $0x1c0] sm:$0xff]  ;;  %v80_v49 = vld [vmem:[%s922_s0 + $0x1c8] sm:$0xff]  ;;  %v479_v50 = vpack.c.bf16 %v30_v42, %v29_v41  ;;  %v481_v52 = vpack.c.bf16 %v48_v47, %v47_v46 }
   0xd   :  { %v511_v51 = vpack.c.bf16 %v62_v45, %v61_v44  ;;  %v31_v53 = vld [vmem:[%s922_s0 + $0x40] sm:$0xff]  ;;  %v32_v54 = vld [vmem:[%s922_s0 + $0x48] sm:$0xff]  ;;  %v513_v56 = vpack.c.bf16 %v80_v49, %v79_v48  ;;  %v49_v58 = vld [vmem:[%s922_s0 + $0xd0] sm:$0xff] }
   0xe   :  { %476 = vmatpush3.bf16.msra.mxu0 %v475_v34  ;;  %v63_v55 = vld [vmem:[%s922_s0 + $0x140] sm:$0xff]  ;;  %v64_v57 = vld [vmem:[%s922_s0 + $0x148] sm:$0xff]  ;;  %v50_v59 = vld [vmem:[%s922_s0 + $0xd8] sm:$0xff]  ;;  %v483_v62 = vpack.c.bf16 %v32_v54, %v31_v53 }
   0xf   :  { %508 = vmatpush3.bf16.msra.mxu1 %v507_v38  ;;  %478 = vmatprep.subr.bf16.mxu0 %v477_v39  ;;  %v81_v60 = vld [vmem:[%s922_s0 + $0x1d0] sm:$0xff]  ;;  %v82_v61 = vld [vmem:[%s922_s0 + $0x1d8] sm:$0xff]  ;;  %v515_v63 = vpack.c.bf16 %v64_v57, %v63_v55  ;;  %v485_v0 = vpack.c.bf16 %v50_v59, %v49_v58  ;;  %v51_v6 = vld [vmem:[%s922_s0 + $0xe0] sm:$0xff] }
  0x10   :  { %510 = vmatprep.subr.bf16.mxu1 %v509_v43  ;;  %v33_v1 = vld [vmem:[%s922_s0 + $0x50] sm:$0xff]  ;;  %v34_v2 = vld [vmem:[%s922_s0 + $0x58] sm:$0xff]  ;;  %v517_v4 = vpack.c.bf16 %v82_v61, %v81_v60  ;;  %v52_v7 = vld [vmem:[%s922_s0 + $0xe8] sm:$0xff] }
  0x11   :  { %v65_v3 = vld [vmem:[%s922_s0 + $0x150] sm:$0xff]  ;;  %v66_v5 = vld [vmem:[%s922_s0 + $0x158] sm:$0xff]  ;;  %v83_v8 = vld [vmem:[%s922_s0 + $0x1e0] sm:$0xff]  ;;  %v487_v10 = vpack.c.bf16 %v34_v2, %v33_v1  ;;  %v489_v14 = vpack.c.bf16 %v52_v7, %v51_v6 }
  0x12   :  { %480 = vmatpush3.bf16.msra.mxu0 %v479_v50  ;;  %v84_v9 = vld [vmem:[%s922_s0 + $0x1e8] sm:$0xff]  ;;  %v35_v11 = vld [vmem:[%s922_s0 + $0x60] sm:$0xff]  ;;  %v519_v13 = vpack.c.bf16 %v66_v5, %v65_v3  ;;  %v14_v17 = vld [vmem:[%s923_s1 + $0x18] sm:$0xff] }
  0x13   :  { %512 = vmatpush3.bf16.msra.mxu1 %v511_v51  ;;  %482 = vmatprep.subr.bf16.mxu0 %v481_v52  ;;  %v36_v12 = vld [vmem:[%s922_s0 + $0x68] sm:$0xff]  ;;  %v67_v15 = vld [vmem:[%s922_s0 + $0x160] sm:$0xff]  ;;  %v521_v18 = vpack.c.bf16 %v84_v9, %v83_v8  ;;  %v53_v20 = vld [vmem:[%s922_s0 + $0xf0] sm:$0xff] }
  0x14   :  { %514 = vmatprep.subr.bf16.mxu1 %v513_v56  ;;  %v12_v16 = vld [vmem:[%s923_s1 + $0x8] sm:$0xff]  ;;  %v54_v21 = vld [vmem:[%s922_s0 + $0xf8] sm:$0xff]  ;;  %v85_v22 = vld [vmem:[%s922_s0 + $0x1f0] sm:$0xff]  ;;  %258 = vmatprep.mubr.f32.mxu1 %v14_v17  ;;  %v491_v24 = vpack.c.bf16 %v36_v12, %v35_v11 }
  0x15   :  { %v68_v19 = vld [vmem:[%s922_s0 + $0x168] sm:$0xff]  ;;  %183 = vmatprep.mubr.f32.mxu0 %v12_v16  ;;  %v86_v23 = vld [vmem:[%s922_s0 + $0x1f8] sm:$0xff]  ;;  %v493_v26 = vpack.c.bf16 %v54_v21, %v53_v20  ;;  %v37_v27 = vld [vmem:[%s922_s0 + $0x70] sm:$0xff] }
  0x16   :  { %484 = vmatpush3.bf16.msra.mxu0 %v483_v62  ;;  %v523_v25 = vpack.c.bf16 %v68_v19, %v67_v15  ;;  %v38_v28 = vld [vmem:[%s922_s0 + $0x78] sm:$0xff]  ;;  %v69_v29 = vld [vmem:[%s922_s0 + $0x170] sm:$0xff]  ;;  %v525_v30 = vpack.c.bf16 %v86_v23, %v85_v22  ;;  %v103_v32 = vld [vmem:[%s922_s0 + $0x280] sm:$0xff] }
  0x17   :  { %516 = vmatpush3.bf16.msra.mxu1 %v515_v63  ;;  %486 = vmatprep.subr.bf16.mxu0 %v485_v0  ;;  %v70_v31 = vld [vmem:[%s922_s0 + $0x178] sm:$0xff]  ;;  %v104_v33 = vld [vmem:[%s922_s0 + $0x288] sm:$0xff]  ;;  %v495_v34 = vpack.c.bf16 %v38_v28, %v37_v27  ;;  %v87_v37 = vld [vmem:[%s922_s0 + $0x200] sm:$0xff] }
  0x18   :  { %518 = vmatprep.subr.bf16.mxu1 %v517_v4  ;;  %v527_v35 = vpack.c.bf16 %v70_v31, %v69_v29  ;;  %v529_v36 = vpack.c.bf16 %v104_v33, %v103_v32  ;;  %v88_v38 = vld [vmem:[%s922_s0 + $0x208] sm:$0xff]  ;;  %v105_v39 = vld [vmem:[%s922_s0 + $0x290] sm:$0xff]  ;;  %v106_v40 = vld [vmem:[%s922_s0 + $0x298] sm:$0xff] }
  0x19   :  { %v11_v41 = vld [vmem:[%s923_s1] sm:$0xff]  ;;  %v531_v42 = vpack.c.bf16 %v88_v38, %v87_v37  ;;  %v13_v43 = vld [vmem:[%s923_s1 + $0x10] sm:$0xff]  ;;  %v533_v44 = vpack.c.bf16 %v106_v40, %v105_v39  ;;  %v90_v46 = vld [vmem:[%s922_s0 + $0x218] sm:$0xff] }
  0x1a   :  { %488 = vmatpush3.bf16.msra.mxu0 %v487_v10  ;;  %v89_v45 = vld [vmem:[%s922_s0 + $0x210] sm:$0xff]  ;;  %v107_v47 = vld [vmem:[%s922_s0 + $0x2a0] sm:$0xff]  ;;  %v108_v48 = vld [vmem:[%s922_s0 + $0x2a8] sm:$0xff] }
  0x1b   :  { %520 = vmatpush3.bf16.msra.mxu1 %v519_v13  ;;  %490 = vmatprep.subr.bf16.mxu0 %v489_v14  ;;  %v18_v49 = vld [vmem:[%s923_s1 + $0x38] sm:$0xff]  ;;  %v535_v50 = vpack.c.bf16 %v90_v46, %v89_v45  ;;  %v20_v51 = vld [vmem:[%s923_s1 + $0x48] sm:$0xff]  ;;  %v17_v52 = vld [vmem:[%s923_s1 + $0x30] sm:$0xff]  ;;  %v537_v53 = vpack.c.bf16 %v108_v48, %v107_v47 }
  0x1c   :  { %522 = vmatprep.subr.bf16.mxu1 %v521_v18  ;;  %v91_v54 = vld [vmem:[%s922_s0 + $0x220] sm:$0xff]  ;;  %v92_v55 = vld [vmem:[%s922_s0 + $0x228] sm:$0xff]  ;;  %v109_v57 = vld [vmem:[%s922_s0 + $0x2b0] sm:$0xff] }
  0x1d   :  { %v19_v56 = vld [vmem:[%s923_s1 + $0x40] sm:$0xff]  ;;  %v110_v58 = vld [vmem:[%s922_s0 + $0x2b8] sm:$0xff]  ;;  %v16_v59 = vld [vmem:[%s923_s1 + $0x28] sm:$0xff]  ;;  %v539_v60 = vpack.c.bf16 %v92_v55, %v91_v54 }
  0x1e   :  { %492 = vmatpush3.bf16.msra.mxu0 %v491_v24  ;;  %v22_v61 = vld [vmem:[%s923_s1 + $0x58] sm:$0xff]  ;;  %v541_v62 = vpack.c.bf16 %v110_v58, %v109_v57  ;;  %v93_v63 = vld [vmem:[%s922_s0 + $0x230] sm:$0xff]  ;;  %v111_v1 = vld [vmem:[%s922_s0 + $0x2c0] sm:$0xff] }
  0x1f   :  { %524 = vmatpush3.bf16.msra.mxu1 %v523_v25  ;;  %494 = vmatprep.subr.bf16.mxu0 %v493_v26  ;;  %v94_v0 = vld [vmem:[%s922_s0 + $0x238] sm:$0xff]  ;;  %v112_v2 = vld [vmem:[%s922_s0 + $0x2c8] sm:$0xff]  ;;  %v95_v5 = vld [vmem:[%s922_s0 + $0x240] sm:$0xff] }
  0x20   :  { %526 = vmatprep.subr.bf16.mxu1 %v525_v30  ;;  %v543_v3 = vpack.c.bf16 %v94_v0, %v93_v63  ;;  %v545_v4 = vpack.c.bf16 %v112_v2, %v111_v1  ;;  %v96_v6 = vld [vmem:[%s922_s0 + $0x248] sm:$0xff]  ;;  %v113_v7 = vld [vmem:[%s922_s0 + $0x2d0] sm:$0xff]  ;;  %v114_v8 = vld [vmem:[%s922_s0 + $0x2d8] sm:$0xff] }
  0x21   :  { %v547_v9 = vpack.c.bf16 %v96_v6, %v95_v5  ;;  %v549_v10 = vpack.c.bf16 %v114_v8, %v113_v7  ;;  %v97_v11 = vld [vmem:[%s922_s0 + $0x250] sm:$0xff]  ;;  %v98_v12 = vld [vmem:[%s922_s0 + $0x258] sm:$0xff]  ;;  %v115_v13 = vld [vmem:[%s922_s0 + $0x2e0] sm:$0xff] }
  0x22   :  { %496 = vmatpush3.bf16.msra.mxu0 %v495_v34  ;;  %v116_v14 = vld [vmem:[%s922_s0 + $0x2e8] sm:$0xff]  ;;  %v551_v15 = vpack.c.bf16 %v98_v12, %v97_v11  ;;  %v99_v17 = vld [vmem:[%s922_s0 + $0x260] sm:$0xff]  ;;  %v117_v19 = vld [vmem:[%s922_s0 + $0x2f0] sm:$0xff] }
  0x23   :  { %528 = vmatpush3.bf16.msra.mxu1 %v527_v35  ;;  %530 = vmatprep.subr.bf16.mxu0 %v529_v36  ;;  %v553_v16 = vpack.c.bf16 %v116_v14, %v115_v13  ;;  %v100_v18 = vld [vmem:[%s922_s0 + $0x268] sm:$0xff]  ;;  %v118_v20 = vld [vmem:[%s922_s0 + $0x2f8] sm:$0xff]  ;;  %v101_v23 = vld [vmem:[%s922_s0 + $0x270] sm:$0xff] }
  0x24   :  { %561 = vmatprep.subr.bf16.mxu1 %v529_v36  ;;  %v555_v21 = vpack.c.bf16 %v100_v18, %v99_v17  ;;  %v557_v22 = vpack.c.bf16 %v118_v20, %v117_v19  ;;  %v102_v24 = vld [vmem:[%s922_s0 + $0x278] sm:$0xff]  ;;  %v15_v26 = vld [vmem:[%s923_s1 + $0x20] sm:$0xff]  ;;  %v21_v27 = vld [vmem:[%s923_s1 + $0x50] sm:$0xff] }
  0x25   :  { %184 = vmatmul.mubr.f32.vlgmr.msra.gmra.mrb[0].mxu0 %v11_v41  ;;  %v559_v25 = vpack.c.bf16 %v102_v24, %v101_v23 }
  0x26   :  { %259 = vmatmul.mubr.f32.vlgmr.msra.gmra.mrb[0].mxu1 %v13_v43  ;;  %532 = vmatpush3.bf16.msra.mxu0 %v531_v42 }
  0x27   :  { %569 = vmatpush3.bf16.msra.mxu1 %v531_v42  ;;  %534 = vmatprep.subr.bf16.mxu0 %v533_v44 }
  0x28   :  { %562 = vmatprep.subr.bf16.mxu1 %v533_v44  ;;  %188 = vmatprep.mubr.f32.mxu0 %v18_v49 }
  0x29   :  { %263 = vmatprep.mubr.f32.mxu1 %v20_v51  ;;  %189 = vmatmul.mubr.f32.gmra.mrb[2].mxu0 %v17_v52 }
  0x2a   :  { %536 = vmatpush3.bf16.msra.mxu0 %v535_v50  ;;  %264 = vmatmul.mubr.f32.gmra.mrb[2].mxu1 %v19_v56 }
  0x2b   :  { %570 = vmatpush3.bf16.msra.mxu1 %v535_v50  ;;  %538 = vmatprep.subr.bf16.mxu0 %v537_v53 }
  0x2c   :  { %563 = vmatprep.subr.bf16.mxu1 %v537_v53  ;;  %333 = vmatprep.mubr.f32.mxu0 %v16_v59 }
  0x2d   :  { %338 = vmatprep.mubr.f32.mxu1 %v22_v61 }
  0x2e   :  { %540 = vmatpush3.bf16.msra.mxu0 %v539_v60 }
  0x2f   :  { %571 = vmatpush3.bf16.msra.mxu1 %v539_v60  ;;  %542 = vmatprep.subr.bf16.mxu0 %v541_v62 }
  0x30   :  { %564 = vmatprep.subr.bf16.mxu1 %v541_v62 }
  0x32   :  { %544 = vmatpush3.bf16.msra.mxu0 %v543_v3 }
  0x33   :  { %572 = vmatpush3.bf16.msra.mxu1 %v543_v3  ;;  %546 = vmatprep.subr.bf16.mxu0 %v545_v4 }
  0x34   :  { %565 = vmatprep.subr.bf16.mxu1 %v545_v4 }
  0x36   :  { %548 = vmatpush3.bf16.msra.mxu0 %v547_v9 }
  0x37   :  { %573 = vmatpush3.bf16.msra.mxu1 %v547_v9  ;;  %550 = vmatprep.subr.bf16.mxu0 %v549_v10 }
  0x38   :  { %566 = vmatprep.subr.bf16.mxu1 %v549_v10 }
  0x3a   :  { %552 = vmatpush3.bf16.msra.mxu0 %v551_v15 }
  0x3b   :  { %574 = vmatpush3.bf16.msra.mxu1 %v551_v15  ;;  %554 = vmatprep.subr.bf16.mxu0 %v553_v16 }
  0x3c   :  { %567 = vmatprep.subr.bf16.mxu1 %v553_v16 }
  0x3e   :  { %556 = vmatpush3.bf16.msra.mxu0 %v555_v21 }
  0x3f   :  { %575 = vmatpush3.bf16.msra.mxu1 %v555_v21  ;;  %558 = vmatprep.subr.bf16.mxu0 %v557_v22 }
  0x40   :  { %568 = vmatprep.subr.bf16.mxu1 %v557_v22 }
  0x42   :  { %560 = vmatpush3.bf16.msra.mxu0 %v559_v25 }
  0x43   :  { %576 = vmatpush3.bf16.msra.mxu1 %v559_v25 }
  0x45   :  { %334 = vmatmul.mubr.f32.vlgmr.msra.gmra.mrb[4].mxu0 %v15_v26 }
  0x46   :  { %339 = vmatmul.mubr.f32.vlgmr.msra.gmra.mrb[4].mxu1 %v21_v27 }
  0xf8   :  { %v383_v28 = vpop.f32.mrb[0].mxu0 }
  0xf9   :  { %v421_v29 = vpop.f32.mrb[0].mxu1  ;;  %v384_v30 = vpop.f32.mrb[1].mxu0 }
  0xfa   :  { %v385_v31 = vadd.f32 %v384_v30, %v383_v28  ;;  %v422_v32 = vpop.f32.mrb[1].mxu1 }
  0xfb   :  { %v423_v33 = vadd.f32 %v422_v32, %v421_v29 }
  0xfc   :  { %v386_v34 = vpop.f32.mrb[2].mxu0 }
  0xfd   :  { %v261_v35 = vadd.f32 %v423_v33, %v385_v31  ;;  %v424_v36 = vpop.f32.mrb[2].mxu1  ;;  %v387_v37 = vpop.f32.mrb[3].mxu0 }
  0xfe   :  { %v388_v38 = vadd.f32 %v387_v37, %v386_v34  ;;  %v425_v39 = vpop.f32.mrb[3].mxu1 }
  0xff   :  { %v426_v40 = vadd.f32 %v425_v39, %v424_v36 }
 0x101   :  { %v266_v41 = vadd.f32 %v426_v40, %v388_v38 }
 0x118   :  { %v459_v42 = vpop.f32.mrb[4].mxu0 }
 0x119   :  { %v462_v43 = vpop.f32.mrb[4].mxu1  ;;  %v460_v44 = vpop.f32.mrb[5].mxu0 }
 0x11a   :  { %v461_v45 = vadd.f32 %v460_v44, %v459_v42  ;;  %v463_v46 = vpop.f32.mrb[5].mxu1 }
 0x11b   :  { %v464_v47 = vadd.f32 %v463_v46, %v462_v43 }
 0x11c   :  { %v336_v48 = vadd.f32 %v461_v45, %v261_v35 }
 0x11d   :  { %v341_v49 = vadd.f32 %v464_v47, %v266_v41 }
 0x11e   :  { %345 = vst.msk [vmem:[%s924_s2] sm:$0xff] %vm344_vm0, %v336_v48 }
 0x11f   :  { %346 = vst.msk [vmem:[%s924_s2 + $0x8] sm:$0xff] %vm344_vm0, %v341_v49 }

</bundles_post_ra>
